<compile_context>
chip_gen: v5e
topology: v5e:2x2
jax: 0.10.0
libtpu: 0.0.40
codegen_flags: <defaults>
</compile_context>

<pallas_src>
import functools

import jax
import jax.numpy as jnp
from jax.experimental import pallas as pl
from jax.experimental.pallas import tpu as pltpu

# ----- "params" of the original module (synthetic, deterministic) -----
TOTAL_ENT = 32
TOTAL_REL = 8
EMBEDDING_DIM = 32   # NOTE: for real models use a multiple of 128 to fill vreg lanes.
MARGIN = 1.0
P_NORM = 1           # torch.norm(..., p=1, dim=-1)

# (pos, neg) pairs handled per grid step.  VMEM per tile is tiny now
# (tables + a few (D, tb) / (vocab, tb) f32 intermediates), so the tile can be
# large to amortize per-step grid overhead.  Must stay a multiple of 128 when
# the batch is actually tiled.
MAX_TILE_PAIRS = 1024


def _distmult_kernel(bh_ref, bt_ref, br_ref,      # index blocks, (2, tb) int32 in VMEM
                     entT_ref, relT_ref,          # transposed tables (D, NE)/(D, NR), VMEM-resident
                     score_ref, hinge_ref,        # outputs: (2, tb) scores, (1, tb) hinge
                     *, margin, p_norm):
    ent_t = entT_ref[...]                         # (D, NE) f32
    rel_t = relT_ref[...]                         # (D, NR) f32
    ne = ent_t.shape[1]
    nr = rel_t.shape[1]
    tb = bh_ref.shape[1]

    # Row-id grids for the one-hot gather (2-D iota; built once per tile).
    ent_rows = jax.lax.broadcasted_iota(jnp.int32, (ne, tb), 0)   # (NE, tb)
    rel_rows = jax.lax.broadcasted_iota(jnp.int32, (nr, tb), 0)   # (NR, tb)

    def gather_t(table_t, rows_iota, idx_row):
        # idx_row: (1, tb) int32.  One-hot^T: (vocab, tb).  MXU gather:
        #   (D, vocab) @ (vocab, tb) -> (D, tb)   (pair axis stays on lanes).
        onehot = (rows_iota == idx_row).astype(table_t.dtype)
        return jnp.dot(table_t, onehot, preferred_element_type=jnp.float32)

    def score_half(hh):                            # hh: 0 = positive, 1 = negative (static)
        h_t = gather_t(ent_t, ent_rows, bh_ref[hh:hh + 1, :])
        t_t = gather_t(ent_t, ent_rows, bt_ref[hh:hh + 1, :])
        r_t = gather_t(rel_t, rel_rows, br_ref[hh:hh + 1, :])
        prod = h_t * t_t * r_t                     # (D, tb), lane-dense VPU work
        if p_norm == 1:
            nrm = jnp.sum(jnp.abs(prod), axis=0, keepdims=True)            # (1, tb)
        elif p_norm == 2:
            nrm = jnp.sqrt(jnp.sum(prod * prod, axis=0, keepdims=True))
        else:
            nrm = jnp.sum(jnp.abs(prod) ** p_norm, axis=0, keepdims=True) ** (1.0 / p_norm)
        return -nrm                                # (1, tb)

    pos = score_half(0)
    neg = score_half(1)

    # Lane-dense stores: row 0 = positive scores, row 1 = negative scores.
    score_ref[...] = jnp.concatenate([pos, neg], axis=0)          # (2, tb)
    # MarginRankingLoss(target=-1) per-pair hinge; final mean is a trivial
    # wrapper-side reduction so the grid axis stays fully parallel.
    hinge_ref[...] = jnp.maximum(pos - neg + margin, 0.0)         # (1, tb)


@jax.jit
def distmult_forward(ent_emb, rel_emb, batch_h, batch_t, batch_r, batch_y):
    """Returns (loss, pos_score, neg_score), matching the PyTorch forward."""
    del batch_y  # the reference loss uses a constant target of -1
    b = batch_h.shape[0]
    half = b // 2
    d = ent_emb.shape[1]
    ne = ent_emb.shape[0]
    nr = rel_emb.shape[0]

    if half > MAX_TILE_PAIRS and half % MAX_TILE_PAIRS == 0:
        tb = MAX_TILE_PAIRS
    else:
        tb = half                                  # single tile (demo-sized batches)
    n_tiles = half // tb

    # Layout plumbing: tables transposed so the embedding dim sits on sublanes
    # and the per-pair axis stays on lanes throughout the kernel.
    ent_t = jnp.transpose(ent_emb).astype(jnp.float32)    # (D, NE)
    rel_t = jnp.transpose(rel_emb).astype(jnp.float32)    # (D, NR)

    # Row 0 = positive-triple indices, row 1 = negative-triple indices.
    bh2 = batch_h.astype(jnp.int32).reshape(2, half)
    bt2 = batch_t.astype(jnp.int32).reshape(2, half)
    br2 = batch_r.astype(jnp.int32).reshape(2, half)

    kernel = functools.partial(_distmult_kernel, margin=MARGIN, p_norm=P_NORM)

    score2d, hinge = pl.pallas_call(
        kernel,
        grid_spec=pltpu.PrefetchScalarGridSpec(
            num_scalar_prefetch=0,
            grid=(n_tiles,),
            in_specs=[pl.BlockSpec((2, tb), lambda i: (0, i)),      # batch_h (pos/neg rows)
                      pl.BlockSpec((2, tb), lambda i: (0, i)),      # batch_t
                      pl.BlockSpec((2, tb), lambda i: (0, i)),      # batch_r
                      pl.BlockSpec((d, ne), lambda i: (0, 0)),      # entity table, VMEM-resident
                      pl.BlockSpec((d, nr), lambda i: (0, 0))],     # relation table, VMEM-resident
            out_specs=[pl.BlockSpec((2, tb), lambda i: (0, i)),     # scores (lane-dense)
                       pl.BlockSpec((1, tb), lambda i: (0, i))],    # hinge values (lane-dense)
        ),
        out_shape=(jax.ShapeDtypeStruct((2, half), jnp.float32),
                   jax.ShapeDtypeStruct((1, half), jnp.float32)),
        compiler_params=pltpu.CompilerParams(
            dimension_semantics=("parallel",)),    # no cross-tile carry -> megacore-shardable
    )(bh2, bt2, br2, ent_t, rel_t)

    pos_score = score2d[0]                          # (half,)
    neg_score = score2d[1]                          # (half,)
    loss = jnp.sum(hinge) / half                    # mean over the half pairs
    return loss, pos_score, neg_score


def _xavier_uniform(key, shape):
    # PyTorch xavier_uniform_ over the (num_embeddings, dim) weight.
    bound = (6.0 / (shape[0] + shape[1])) ** 0.5
    return jax.random.uniform(key, shape, jnp.float32, -bound, bound)


if __name__ == "__main__":
    key = jax.random.PRNGKey(0)
    k_ent, k_rel, k_h, k_t, k_r = jax.random.split(key, 5)

    # Deterministic "xavier_uniform" initialized embedding tables.
    ent_emb = _xavier_uniform(k_ent, (TOTAL_ENT, EMBEDDING_DIM))
    rel_emb = _xavier_uniform(k_rel, (TOTAL_REL, EMBEDDING_DIM))

    B = 8  # batch: first half positive triples, second half negative triples
    batch_h = jax.random.randint(k_h, (B,), 0, TOTAL_ENT, dtype=jnp.int32)
    batch_t = jax.random.randint(k_t, (B,), 0, TOTAL_ENT, dtype=jnp.int32)
    batch_r = jax.random.randint(k_r, (B,), 0, TOTAL_REL, dtype=jnp.int32)
    batch_y = jnp.concatenate(
        [jnp.ones((B // 2,), jnp.float32), -jnp.ones((B // 2,), jnp.float32)])

    loss, pos_score, neg_score = distmult_forward(
        ent_emb, rel_emb, batch_h, batch_t, batch_r, batch_y)
    jax.block_until_ready((loss, pos_score, neg_score))

    # Pure-JAX reference check of the kernel math.
    h = ent_emb[batch_h]
    t = ent_emb[batch_t]
    r = rel_emb[batch_r]
    ref_score = -jnp.sum(jnp.abs(h * t * r), axis=-1)
    ref_pos, ref_neg = ref_score[: B // 2], ref_score[B // 2:]
    ref_loss = jnp.mean(jnp.maximum(ref_pos - ref_neg + MARGIN, 0.0))
    assert jnp.allclose(pos_score, ref_pos, atol=1e-5, rtol=1e-5)
    assert jnp.allclose(neg_score, ref_neg, atol=1e-5, rtol=1e-5)
    assert jnp.allclose(loss, ref_loss, atol=1e-5, rtol=1e-5)

    print("KERNEL_OK")
</pallas_src>

<mosaic_0001>
module attributes {stable_mosaic.version = 11 : i64} {
  func.func @_distmult_kernel(%arg0: i32, %arg1: memref<2x4xi32, #tpu.memory_space<vmem>>, %arg2: memref<2x4xi32, #tpu.memory_space<vmem>>, %arg3: memref<2x4xi32, #tpu.memory_space<vmem>>, %arg4: memref<32x32xf32, #tpu.memory_space<vmem>>, %arg5: memref<32x8xf32, #tpu.memory_space<vmem>>, %arg6: memref<2x4xf32, #tpu.memory_space<vmem>>, %arg7: memref<1x4xf32, #tpu.memory_space<vmem>>) attributes {dimension_semantics = [#tpu.dimension_semantics<parallel>], iteration_bounds = array<i64: 1>, scalar_prefetch = 0 : i64, scratch_operands = 0 : i64, tpu.core_type = #tpu.core_type<tc>, window_params = [{transform_indices = @transform_0, window_bounds = array<i64: 2, 4>}, {transform_indices = @transform_1, window_bounds = array<i64: 2, 4>}, {transform_indices = @transform_2, window_bounds = array<i64: 2, 4>}, {pipeline_mode = #tpu.pipeline_mode<synchronous>, transform_indices = @transform_3, window_bounds = array<i64: 32, 32>}, {pipeline_mode = #tpu.pipeline_mode<synchronous>, transform_indices = @transform_4, window_bounds = array<i64: 32, 8>}, {transform_indices = @transform_5, window_bounds = array<i64: 2, 4>}, {transform_indices = @transform_6, window_bounds = array<i64: 1, 4>}]} {
    %c0 = arith.constant 0 : index
    %c0_0 = arith.constant 0 : index
    %0 = vector.load %arg4[%c0, %c0_0] : memref<32x32xf32, #tpu.memory_space<vmem>>, vector<32x32xf32>
    %c0_1 = arith.constant 0 : index
    %c0_2 = arith.constant 0 : index
    %1 = vector.load %arg5[%c0_1, %c0_2] : memref<32x8xf32, #tpu.memory_space<vmem>>, vector<32x8xf32>
    %2 = tpu.iota {dimensions = array<i32: 0>} : vector<32x4xi32>
    %3 = tpu.iota {dimensions = array<i32: 0>} : vector<8x4xi32>
    %c0_3 = arith.constant 0 : index
    %c0_4 = arith.constant 0 : index
    %4 = vector.load %arg1[%c0_3, %c0_4] : memref<2x4xi32, #tpu.memory_space<vmem>>, vector<1x4xi32>
    %5 = vector.broadcast %4 : vector<1x4xi32> to vector<32x4xi32>
    %6 = arith.cmpi eq, %2, %5 : vector<32x4xi32>
    %7 = arith.extui %6 : vector<32x4xi1> to vector<32x4xi32>
    %8 = arith.sitofp %7 : vector<32x4xi32> to vector<32x4xf32>
    %cst = arith.constant dense<0.000000e+00> : vector<32x4xf32>
    %9 = tpu.matmul %0, %8, %cst {dimension_numbers = #tpu.dot_dimension_numbers<[1], [0], [0], [1], [0, 0, 1, 1], [], []>} : vector<32x32xf32>, vector<32x4xf32>, vector<32x4xf32> -> vector<32x4xf32>
    %c0_5 = arith.constant 0 : index
    %c0_6 = arith.constant 0 : index
    %10 = vector.load %arg2[%c0_5, %c0_6] : memref<2x4xi32, #tpu.memory_space<vmem>>, vector<1x4xi32>
    %11 = vector.broadcast %10 : vector<1x4xi32> to vector<32x4xi32>
    %12 = arith.cmpi eq, %2, %11 : vector<32x4xi32>
    %13 = arith.extui %12 : vector<32x4xi1> to vector<32x4xi32>
    %14 = arith.sitofp %13 : vector<32x4xi32> to vector<32x4xf32>
    %cst_7 = arith.constant dense<0.000000e+00> : vector<32x4xf32>
    %15 = tpu.matmul %0, %14, %cst_7 {dimension_numbers = #tpu.dot_dimension_numbers<[1], [0], [0], [1], [0, 0, 1, 1], [], []>} : vector<32x32xf32>, vector<32x4xf32>, vector<32x4xf32> -> vector<32x4xf32>
    %c0_8 = arith.constant 0 : index
    %c0_9 = arith.constant 0 : index
    %16 = vector.load %arg3[%c0_8, %c0_9] : memref<2x4xi32, #tpu.memory_space<vmem>>, vector<1x4xi32>
    %17 = vector.broadcast %16 : vector<1x4xi32> to vector<8x4xi32>
    %18 = arith.cmpi eq, %3, %17 : vector<8x4xi32>
    %19 = arith.extui %18 : vector<8x4xi1> to vector<8x4xi32>
    %20 = arith.sitofp %19 : vector<8x4xi32> to vector<8x4xf32>
    %cst_10 = arith.constant dense<0.000000e+00> : vector<32x4xf32>
    %21 = tpu.matmul %1, %20, %cst_10 {dimension_numbers = #tpu.dot_dimension_numbers<[1], [0], [0], [1], [0, 0, 1, 1], [], []>} : vector<32x8xf32>, vector<8x4xf32>, vector<32x4xf32> -> vector<32x4xf32>
    %22 = arith.mulf %9, %15 : vector<32x4xf32>
    %23 = arith.mulf %22, %21 : vector<32x4xf32>
    %24 = math.absf %23 : vector<32x4xf32>
    %cst_11 = arith.constant dense<0.000000e+00> : vector<4xf32>
    %25 = vector.multi_reduction <add>, %24, %cst_11 [0] : vector<32x4xf32> to vector<4xf32>
    %26 = vector.shape_cast %25 : vector<4xf32> to vector<1x4xf32>
    %cst_12 = arith.constant 0.000000e+00 : f32
    %27 = vector.broadcast %cst_12 : f32 to vector<1x4xf32>
    %28 = arith.subf %27, %26 : vector<1x4xf32>
    %c1 = arith.constant 1 : index
    %c0_13 = arith.constant 0 : index
    %29 = vector.load %arg1[%c1, %c0_13] : memref<2x4xi32, #tpu.memory_space<vmem>>, vector<1x4xi32>
    %30 = vector.broadcast %29 : vector<1x4xi32> to vector<32x4xi32>
    %31 = arith.cmpi eq, %2, %30 : vector<32x4xi32>
    %32 = arith.extui %31 : vector<32x4xi1> to vector<32x4xi32>
    %33 = arith.sitofp %32 : vector<32x4xi32> to vector<32x4xf32>
    %cst_14 = arith.constant dense<0.000000e+00> : vector<32x4xf32>
    %34 = tpu.matmul %0, %33, %cst_14 {dimension_numbers = #tpu.dot_dimension_numbers<[1], [0], [0], [1], [0, 0, 1, 1], [], []>} : vector<32x32xf32>, vector<32x4xf32>, vector<32x4xf32> -> vector<32x4xf32>
    %c1_15 = arith.constant 1 : index
    %c0_16 = arith.constant 0 : index
    %35 = vector.load %arg2[%c1_15, %c0_16] : memref<2x4xi32, #tpu.memory_space<vmem>>, vector<1x4xi32>
    %36 = vector.broadcast %35 : vector<1x4xi32> to vector<32x4xi32>
    %37 = arith.cmpi eq, %2, %36 : vector<32x4xi32>
    %38 = arith.extui %37 : vector<32x4xi1> to vector<32x4xi32>
    %39 = arith.sitofp %38 : vector<32x4xi32> to vector<32x4xf32>
    %cst_17 = arith.constant dense<0.000000e+00> : vector<32x4xf32>
    %40 = tpu.matmul %0, %39, %cst_17 {dimension_numbers = #tpu.dot_dimension_numbers<[1], [0], [0], [1], [0, 0, 1, 1], [], []>} : vector<32x32xf32>, vector<32x4xf32>, vector<32x4xf32> -> vector<32x4xf32>
    %c1_18 = arith.constant 1 : index
    %c0_19 = arith.constant 0 : index
    %41 = vector.load %arg3[%c1_18, %c0_19] : memref<2x4xi32, #tpu.memory_space<vmem>>, vector<1x4xi32>
    %42 = vector.broadcast %41 : vector<1x4xi32> to vector<8x4xi32>
    %43 = arith.cmpi eq, %3, %42 : vector<8x4xi32>
    %44 = arith.extui %43 : vector<8x4xi1> to vector<8x4xi32>
    %45 = arith.sitofp %44 : vector<8x4xi32> to vector<8x4xf32>
    %cst_20 = arith.constant dense<0.000000e+00> : vector<32x4xf32>
    %46 = tpu.matmul %1, %45, %cst_20 {dimension_numbers = #tpu.dot_dimension_numbers<[1], [0], [0], [1], [0, 0, 1, 1], [], []>} : vector<32x8xf32>, vector<8x4xf32>, vector<32x4xf32> -> vector<32x4xf32>
    %47 = arith.mulf %34, %40 : vector<32x4xf32>
    %48 = arith.mulf %47, %46 : vector<32x4xf32>
    %49 = math.absf %48 : vector<32x4xf32>
    %cst_21 = arith.constant dense<0.000000e+00> : vector<4xf32>
    %50 = vector.multi_reduction <add>, %49, %cst_21 [0] : vector<32x4xf32> to vector<4xf32>
    %51 = vector.shape_cast %50 : vector<4xf32> to vector<1x4xf32>
    %cst_22 = arith.constant 0.000000e+00 : f32
    %52 = vector.broadcast %cst_22 : f32 to vector<1x4xf32>
    %53 = arith.subf %52, %51 : vector<1x4xf32>
    %54 = tpu.concatenate %28, %53 in 0 : vector<1x4xf32>, vector<1x4xf32> -> vector<2x4xf32>
    %c0_23 = arith.constant 0 : index
    %c0_24 = arith.constant 0 : index
    %55 = vector.load %arg6[%c0_23, %c0_24] : memref<2x4xf32, #tpu.memory_space<vmem>>, vector<2x4xf32>
    tpu.vector_store %arg6[%c0_23, %c0_24], %54 {strides = array<i32>} : memref<2x4xf32, #tpu.memory_space<vmem>>, vector<2x4xf32>,
    %56 = arith.subf %28, %53 : vector<1x4xf32>
    %cst_25 = arith.constant 1.000000e+00 : f32
    %57 = vector.broadcast %cst_25 : f32 to vector<1x4xf32>
    %58 = arith.addf %56, %57 : vector<1x4xf32>
    %cst_26 = arith.constant 0.000000e+00 : f32
    %59 = vector.broadcast %cst_26 : f32 to vector<1x4xf32>
    %60 = arith.maximumf %58, %59 : vector<1x4xf32>
    %c0_27 = arith.constant 0 : index
    %c0_28 = arith.constant 0 : index
    %61 = vector.load %arg7[%c0_27, %c0_28] : memref<1x4xf32, #tpu.memory_space<vmem>>, vector<1x4xf32>
    tpu.vector_store %arg7[%c0_27, %c0_28], %60 {strides = array<i32>} : memref<1x4xf32, #tpu.memory_space<vmem>>, vector<1x4xf32>,
    return
  }
  func.func @transform_0(%arg0: i32) -> (i32, i32) {
    %c0_i32 = arith.constant 0 : i32
    %c0_i32_0 = arith.constant 0 : i32
    return %c0_i32, %arg0 : i32, i32
  }
  func.func @transform_1(%arg0: i32) -> (i32, i32) {
    %c0_i32 = arith.constant 0 : i32
    %c0_i32_0 = arith.constant 0 : i32
    return %c0_i32, %arg0 : i32, i32
  }
  func.func @transform_2(%arg0: i32) -> (i32, i32) {
    %c0_i32 = arith.constant 0 : i32
    %c0_i32_0 = arith.constant 0 : i32
    return %c0_i32, %arg0 : i32, i32
  }
  func.func @transform_3(%arg0: i32) -> (i32, i32) {
    %c0_i32 = arith.constant 0 : i32
    %c0_i32_0 = arith.constant 0 : i32
    %c0_i32_1 = arith.constant 0 : i32
    return %c0_i32, %c0_i32_0 : i32, i32
  }
  func.func @transform_4(%arg0: i32) -> (i32, i32) {
    %c0_i32 = arith.constant 0 : i32
    %c0_i32_0 = arith.constant 0 : i32
    %c0_i32_1 = arith.constant 0 : i32
    return %c0_i32, %c0_i32_0 : i32, i32
  }
  func.func @transform_5(%arg0: i32) -> (i32, i32) {
    %c0_i32 = arith.constant 0 : i32
    %c0_i32_0 = arith.constant 0 : i32
    return %c0_i32, %arg0 : i32, i32
  }
  func.func @transform_6(%arg0: i32) -> (i32, i32) {
    %c0_i32 = arith.constant 0 : i32
    %c0_i32_0 = arith.constant 0 : i32
    return %c0_i32, %arg0 : i32, i32
  }
}

</mosaic_0001>

<bundles_post_ra>
// kernel: distmult_forward.1
= control target key start
LH: loop header
LB: loop body
LE: loop exit
PB: predicated region body
PF: predicated region fallthrough
CT: control target
= control target key end

     0   :  { %v30_v0 = vlaneseq  ;;  %vm139_vm0 = vcmask 64512   ;;  %v443_v9 = vmov 1.0   ;;  %vm49_vm12 = vcmask 261120   ;;  %s583_s2 = inlined_call_operand.vmem [shape: s32[2,4], index: 2, kind: input, shape index: {}]   ;;  %s584_s4 = inlined_call_operand.vmem [shape: f32[32,8], index: 4, kind: input, shape index: {}]   ;;  %s585_s0 = inlined_call_operand.vmem [shape: s32[2,4], index: 0, kind: input, shape index: {}]   ;;  %s586_s1 = inlined_call_operand.vmem [shape: s32[2,4], index: 1, kind: input, shape index: {}]   ;;  %s587_s3 = inlined_call_operand.vmem [shape: f32[32,32], index: 3, kind: input, shape index: {}]   ;;  %s588_s5 = inlined_call_operand.vmem [shape: f32[2,4], index: 5, kind: output, shape index: {0}]   ;;  %s589_s6 = inlined_call_operand.vmem [shape: f32[1,4], index: 6, kind: output, shape index: {1}]  }
   0x1   :  { %v437_v1 = vld [vmem:[%s583_s2] ss:$0 sm:$0xff]  ;;  %v490_v4 = vld [vmem:[%s584_s4 + $0x8] sm:$0xff]  ;;  %v439_v5 = vld [vmem:[%s585_s0 + $0x1] ss:$0 sm:$0xff] }
   0x2   :  { %v482_v2 = vshrl.u32 %v30_v0, 7  ;;  %v438_v3 = vld [vmem:[%s585_s0] ss:$0 sm:$0xff]  ;;  %v441_v11 = vld [vmem:[%s586_s1 + $0x1] ss:$0 sm:$0xff]  ;;  %v24_v14 = vld [vmem:[%s587_s3 + $0x10] sm:$0xff] }
   0x3   :  { %v26_v10 = vld [vmem:[%s584_s4] sm:$0xff]  ;;  %v28_v15 = vld [vmem:[%s584_s4 + $0x10] sm:$0xff]  ;;  %v25_v17 = vld [vmem:[%s587_s3 + $0x18] sm:$0xff] }
   0x4   :  { %vm136_vm1 = vcmp.eq.s32.totalorder %v482_v2, %v437_v1  ;;  %v34_v6 = vadd.s32 24, %v482_v2  ;;  %v33_v7 = vadd.s32 16, %v482_v2  ;;  %v32_v8 = vadd.s32 8, %v482_v2  ;;  %v440_v12 = vld [vmem:[%s586_s1] ss:$0 sm:$0xff]  ;;  %v29_v18 = vld [vmem:[%s584_s4 + $0x18] sm:$0xff] }
   0x5   :  { %435 = vmatpush.msk.msra.mxu3 %vm136_vm1, %v443_v9  ;;  %396 = vmatpush.msk.msra.mxu2 %vm136_vm1, %v443_v9  ;;  %vm37_vm10 = vcmp.eq.s32.totalorder %v482_v2, %v438_v3  ;;  %v442_v13 = vld [vmem:[%s583_s2 + $0x1] ss:$0 sm:$0xff]  ;;  %vm210_vm11 = vcmp.eq.s32.totalorder %v482_v2, %v439_v5  ;;  %v23_v19 = vld [vmem:[%s587_s3 + $0x8] sm:$0xff] }
   0x6   :  { %398 = vmatmul.msk.f32.vlgmr.msra.gmra.mxu3 %vm139_vm0, %v490_v4  ;;  %vm40_vm2 = vcmp.eq.s32.totalorder %v34_v6, %v438_v3  ;;  %vm213_vm3 = vcmp.eq.s32.totalorder %v34_v6, %v439_v5  ;;  %vm39_vm4 = vcmp.eq.s32.totalorder %v33_v7, %v438_v3  ;;  %vm212_vm5 = vcmp.eq.s32.totalorder %v33_v7, %v439_v5  ;;  %v22_v16 = vld [vmem:[%s587_s3] sm:$0xff] }
   0x7   :  { %431 = vmatpush.msk.msra.mxu1 %vm40_vm2, %v443_v9  ;;  %405 = vmatpush.msk.msrb.mxu3 %vm213_vm3, %v443_v9  ;;  %vm38_vm6 = vcmp.eq.s32.totalorder %v32_v8, %v438_v3  ;;  %vm211_vm7 = vcmp.eq.s32.totalorder %v32_v8, %v439_v5  ;;  %vm256_vm8 = vcmp.eq.s32.totalorder %v34_v6, %v441_v11 }
   0x8   :  { %375 = vmatpush.msk.msra.mxu0 %vm40_vm2, %v443_v9  ;;  %397 = vmatmul.msk.f32.vlgmr.msra.gmra.mxu2 %vm139_vm0, %v26_v10  ;;  %vm255_vm9 = vcmp.eq.s32.totalorder %v33_v7, %v441_v11  ;;  %vm96_vm13 = vcmp.eq.s32.totalorder %v34_v6, %v440_v12  ;;  %vm254_vm14 = vcmp.eq.s32.totalorder %v32_v8, %v441_v11 }
   0x9   :  { %432 = vmatpush.msk.msra.mxu1 %vm39_vm4, %v443_v9  ;;  %406 = vmatpush.msk.msrb.mxu3 %vm212_vm5, %v443_v9  ;;  %vm296_vm15 = vcmp.eq.s32.totalorder %v482_v2, %v442_v13  ;;  %vm95_vm1 = vcmp.eq.s32.totalorder %v33_v7, %v440_v12  ;;  %vm253_vm2 = vcmp.eq.s32.totalorder %v482_v2, %v441_v11  ;;  %vm354_vm5 = vcmask 1040384  }
   0xa   :  { %376 = vmatpush.msk.msra.mxu0 %vm39_vm4, %v443_v9  ;;  %417 = vmatpush.msk.msrb.mxu2 %vm256_vm8, %v443_v9  ;;  %vm94_vm3 = vcmp.eq.s32.totalorder %v32_v8, %v440_v12  ;;  %vm93_vm4 = vcmp.eq.s32.totalorder %v482_v2, %v440_v12 }
   0xb   :  { %433 = vmatpush.msk.msra.mxu1 %vm38_vm6, %v443_v9  ;;  %407 = vmatpush.msk.msrb.mxu3 %vm211_vm7, %v443_v9  ;;  %vm361_vm7 = vcmask 24576  }
   0xc   :  { %377 = vmatpush.msk.msra.mxu0 %vm38_vm6, %v443_v9  ;;  %418 = vmatpush.msk.msrb.mxu2 %vm255_vm9, %v443_v9  ;;  %vm356_vm6 = vcmask 25600  }
   0xd   :  { %434 = vmatpush.msk.msra.mxu1 %vm37_vm10, %v443_v9  ;;  %408 = vmatpush.msk.msrb.mxu3 %vm210_vm11, %v443_v9 }
   0xe   :  { %381 = vmatmul.msk.f32.vlgmr.msra.gmra.mxu1 %vm49_vm12, %v24_v14  ;;  %399 = vmatmul.msk.f32.gmra.mxu3 %vm139_vm0, %v28_v15 }
   0xf   :  { %378 = vmatpush.msk.msra.mxu0 %vm37_vm10, %v443_v9  ;;  %387 = vmatpush.msk.msrb.mxu1 %vm96_vm13, %v443_v9 }
  0x10   :  { %379 = vmatmul.msk.f32.vlgmr.msra.gmra.mxu0 %vm49_vm12, %v22_v16  ;;  %419 = vmatpush.msk.msrb.mxu2 %vm254_vm14, %v443_v9 }
  0x11   :  { %426 = vmatpush.msk.msrb.mxu0 %vm296_vm15, %v443_v9  ;;  %388 = vmatpush.msk.msrb.mxu1 %vm95_vm1, %v443_v9 }
  0x12   :  { %420 = vmatpush.msk.msrb.mxu2 %vm253_vm2, %v443_v9 }
  0x13   :  { %389 = vmatpush.msk.msrb.mxu1 %vm94_vm3, %v443_v9  ;;  %421 = vmatmul.msk.f32.vlgmr.msrb.gmra.mxu2 %vm49_vm12, %v22_v16 }
  0x15   :  { %390 = vmatpush.msk.msrb.mxu1 %vm93_vm4, %v443_v9 }
  0x16   :  { %382 = vmatmul.msk.f32.gmra.mxu1 %vm49_vm12, %v25_v17  ;;  %400 = vmatmul.msk.f32.gmra.mxu3 %vm139_vm0, %v29_v18 }
  0x18   :  { %380 = vmatmul.msk.f32.gmra.mxu0 %vm49_vm12, %v23_v19 }
  0x1b   :  { %422 = vmatmul.msk.f32.gmra.mxu2 %vm49_vm12, %v23_v19 }
  0x1e   :  { %391 = vmatmul.msk.f32.vlgmr.msrb.gmra.mxu1 %vm49_vm12, %v22_v16  ;;  %409 = vmatmul.msk.f32.vlgmr.msrb.gmra.mxu3 %vm49_vm12, %v22_v16 }
  0x20   :  { %427 = vmatmul.msk.f32.vlgmr.msrb.gmra.mxu0 %vm139_vm0, %v26_v10 }
  0x23   :  { %423 = vmatmul.msk.f32.gmra.mxu2 %vm49_vm12, %v24_v14 }
  0x26   :  { %392 = vmatmul.msk.f32.gmra.mxu1 %vm49_vm12, %v23_v19  ;;  %410 = vmatmul.msk.f32.gmra.mxu3 %vm49_vm12, %v23_v19 }
  0x28   :  { %428 = vmatmul.msk.f32.gmra.mxu0 %vm139_vm0, %v490_v4 }
  0x2b   :  { %424 = vmatmul.msk.f32.gmra.mxu2 %vm49_vm12, %v25_v17 }
  0x2e   :  { %393 = vmatmul.msk.f32.gmra.mxu1 %vm49_vm12, %v24_v14  ;;  %411 = vmatmul.msk.f32.gmra.mxu3 %vm49_vm12, %v24_v14 }
  0x30   :  { %429 = vmatmul.msk.f32.gmra.mxu0 %vm139_vm0, %v28_v15 }
  0x36   :  { %394 = vmatmul.msk.f32.gmra.mxu1 %vm49_vm12, %v25_v17  ;;  %412 = vmatmul.msk.f32.gmra.mxu3 %vm49_vm12, %v25_v17 }
  0x38   :  { %430 = vmatmul.msk.f32.gmra.mxu0 %vm139_vm0, %v29_v18  ;;  %vm193_vm0 = vcmask 31744  }
  0x89   :  { %v172_v20 = vpop.f32.mrf.mxu3 }
  0x8b   :  { %v85_v21 = vpop.f32.mrf.mxu1  ;;  %v169_v23 = vpop.f32.mrf.mxu2 }
  0x8d   :  { %v79_v22 = vpop.f32.mrf.mxu0 }
  0x91   :  { %v175_v24 = vpop.f32.mrf.mxu3 }
  0x93   :  { %v88_v25 = vpop.f32.mrf.mxu1 }
  0x95   :  { %v82_v26 = vpop.f32.mrf.mxu0 }
  0x96   :  { %v282_v28 = vpop.f32.mrf.mxu2 }
  0x99   :  { %v178_v27 = vpop.f32.mrf.mxu3 }
  0x9b   :  { %v122_v29 = vpop.f32.mrf.mxu1 }
  0x9c   :  { %v181_v37 = vmul.f32 %v122_v29, %v79_v22 }
  0x9d   :  { %v316_v30 = vpop.f32.mrf.mxu0 }
  0x9e   :  { %v285_v33 = vpop.f32.mrf.mxu2  ;;  %v185_v42 = vmul.f32 %v181_v37, %v169_v23 }
  0xa0   :  { %v189_v49 = vand.u32 2147483647, %v185_v42 }
  0xa1   :  { %v239_v31 = vpop.f32.mrf.mxu3 }
  0xa2   :  { %v328_v46 = vmul.f32 %v282_v28, %v239_v31  ;;  %v194_v58 = vsel %vm193_vm0, %v189_v49, 0.0 }
  0xa3   :  { %v125_v32 = vpop.f32.mrf.mxu1 }
  0xa4   :  { %v182_v35 = vmul.f32 %v125_v32, %v82_v26  ;;  %v332_v55 = vmul.f32 %v328_v46, %v316_v30 }
  0xa5   :  { %v319_v34 = vpop.f32.mrf.mxu0 }
  0xa6   :  { %v186_v39 = vmul.f32 %v182_v35, %v172_v20  ;;  %v288_v41 = vpop.f32.mrf.mxu2  ;;  %v336_v0 = vand.u32 2147483647, %v332_v55 }
  0xa8   :  { %v190_v47 = vand.u32 2147483647, %v186_v39  ;;  %v340_v10 = vsel %vm193_vm0, %v336_v0, 0.0 }
  0xa9   :  { %v242_v36 = vpop.f32.mrf.mxu3 }
  0xaa   :  { %v329_v43 = vmul.f32 %v285_v33, %v242_v36  ;;  %v195_v54 = vsel %vm193_vm0, %v190_v47, 0.0 }
  0xab   :  { %v128_v38 = vpop.f32.mrf.mxu1  ;;  %v196_v62 = vadd.f32 %v195_v54, %v194_v58 }
  0xac   :  { %v183_v40 = vmul.f32 %v128_v38, %v85_v21  ;;  %v333_v51 = vmul.f32 %v329_v43, %v319_v34 }
  0xad   :  { %v322_v45 = vpop.f32.mrf.mxu0 }
  0xae   :  { %v187_v44 = vmul.f32 %v183_v40, %v175_v24  ;;  %v337_v60 = vand.u32 2147483647, %v333_v51  ;;  %v291_v63 = vpop.f32.mrf.mxu2 }
  0xb0   :  { %v191_v50 = vand.u32 2147483647, %v187_v44  ;;  %v341_v6 = vsel %vm193_vm0, %v337_v60, 0.0 }
  0xb1   :  { %v245_v48 = vpop.f32.mrf.mxu3  ;;  %v342_v13 = vadd.f32 %v341_v6, %v340_v10 }
  0xb2   :  { %v330_v52 = vmul.f32 %v288_v41, %v245_v48  ;;  %v197_v59 = vsel %vm193_vm0, %v191_v50, 0.0 }
  0xb3   :  { %v131_v53 = vpop.f32.mrf.mxu1  ;;  %v198_v3 = vadd.f32 %v197_v59, %v196_v62 }
  0xb4   :  { %v184_v56 = vmul.f32 %v131_v53, %v88_v25  ;;  %v334_v57 = vmul.f32 %v330_v52, %v322_v45 }
  0xb5   :  { %v325_v5 = vpop.f32.mrf.mxu0 }
  0xb6   :  { %v188_v61 = vmul.f32 %v184_v56, %v178_v27  ;;  %v338_v2 = vand.u32 2147483647, %v334_v57 }
  0xb8   :  { %v192_v1 = vand.u32 2147483647, %v188_v61  ;;  %v343_v11 = vsel %vm193_vm0, %v338_v2, 0.0 }
  0xb9   :  { %v248_v4 = vpop.f32.mrf.mxu3  ;;  %v344_v17 = vadd.f32 %v343_v11, %v342_v13 }
  0xba   :  { %v199_v7 = vsel %vm193_vm0, %v192_v1, 0.0  ;;  %v331_v8 = vmul.f32 %v291_v63, %v248_v4 }
  0xbb   :  { %v200_v9 = vadd.f32 %v199_v7, %v198_v3 }
  0xbc   :  { %v335_v12 = vmul.f32 %v331_v8, %v325_v5 }
  0xbd   :  { %v201_v14 = vrot.slane %v200_v9, 4 }
  0xbe   :  { %v339_v15 = vand.u32 2147483647, %v335_v12 }
  0xbf   :  { %v202_v16 = vadd.f32 %v201_v14, %v200_v9 }
  0xc0   :  { %v345_v18 = vsel %vm193_vm0, %v339_v15, 0.0 }
  0xc1   :  { %v203_v19 = vrot.slane %v202_v16, 2  ;;  %v346_v20 = vadd.f32 %v345_v18, %v344_v17 }
  0xc3   :  { %v204_v21 = vadd.f32 %v203_v19, %v202_v16  ;;  %v347_v22 = vrot.slane %v346_v20, 4 }
  0xc5   :  { %v348_v23 = vadd.f32 %v347_v22, %v346_v20  ;;  %v205_v24 = vrot.slane %v204_v21, 1 }
  0xc7   :  { %v349_v25 = vrot.slane %v348_v23, 2  ;;  %v206_v27 = vadd.f32 %v205_v24, %v204_v21 }
  0xc9   :  { %v350_v26 = vadd.f32 %v349_v25, %v348_v23  ;;  %v207_v30 = vsub.f32 0.0, %v206_v27 }
  0xcb   :  { %v351_v28 = vrot.slane %v350_v26, 1 }
  0xcd   :  { %v352_v29 = vadd.f32 %v351_v28, %v350_v26 }
  0xcf   :  { %v353_v31 = vsub.f32 0.0, %v352_v29 }
  0xd1   :  { %v355_v32 = vsel %vm354_vm5, %v207_v30, %v353_v31  ;;  %v358_v33 = vsub.f32 %v207_v30, %v353_v31 }
  0xd2   :  { %357 = vst.msk [vmem:[%s588_s5] sm:$0x3] %vm356_vm6, %v355_v32 }
  0xd3   :  { %v359_v34 = vadd.f32 1.0, %v358_v33 }
  0xd5   :  { %v360_v35 = vmax.f32 %v359_v34, 0.0 }
  0xd7   :  { %362 = vst.msk [vmem:[%s589_s6] sm:$0x1] %vm361_vm7, %v360_v35 }

</bundles_post_ra>
